<compile_context>
chip_gen: v6e
topology: v6e:2x2x1
jax: 0.10.0
libtpu: 0.0.40
codegen_flags: <defaults>
</compile_context>

<pallas_src>
import jax
import jax.numpy as jnp
from jax.experimental import pallas as pl
from jax.experimental.pallas import tpu as pltpu


# --------------------------------------------------------------------------
# Kernels
# --------------------------------------------------------------------------

def _shift_group_kernel(x_ref, o_ref):
    """Lane-dense path. Block = (1, W, H, Ct): one batch, one channel tile of
    one shift group. Group id = pl.program_id(1)."""
    g = pl.program_id(1)
    _, W, H, _ = x_ref.shape

    @pl.when(g == 0)                      # out[w] = x[w-1]; row 0 unchanged
    def _():
        if W > 1:
            o_ref[:, 1:, :, :] = x_ref[:, : W - 1, :, :]
        o_ref[:, :1, :, :] = x_ref[:, :1, :, :]

    @pl.when(g == 1)                      # out[w] = x[w+1]; row W-1 unchanged
    def _():
        if W > 1:
            o_ref[:, : W - 1, :, :] = x_ref[:, 1:, :, :]
        o_ref[:, W - 1 :, :, :] = x_ref[:, W - 1 :, :, :]

    @pl.when(g == 2)                      # out[h] = x[h-1]; col 0 unchanged
    def _():
        if H > 1:
            o_ref[...] = pltpu.roll(x_ref[...], 1, axis=2)
        o_ref[:, :, :1, :] = x_ref[:, :, :1, :]

    @pl.when(g == 3)                      # out[h] = x[h+1]; col H-1 unchanged
    def _():
        if H > 1:
            o_ref[...] = pltpu.roll(x_ref[...], H - 1, axis=2)
        o_ref[:, :, H - 1 :, :] = x_ref[:, :, H - 1 :, :]


def _spatial_shift_fallback_kernel(x_ref, o_ref):
    """Fallback path (C//4 not a multiple of 128). Block = (1, W, H, C)."""
    _, W, H, C = x_ref.shape
    c4, c2, c34 = C // 4, C // 2, 3 * C // 4

    # W-shift groups: slab copies along a non-minor axis.
    if W > 1:
        o_ref[:, 1:, :, :c4] = x_ref[:, : W - 1, :, :c4]
    o_ref[:, :1, :, :c4] = x_ref[:, :1, :, :c4]
    if W > 1:
        o_ref[:, : W - 1, :, c4:c2] = x_ref[:, 1:, :, c4:c2]
    o_ref[:, W - 1 :, :, c4:c2] = x_ref[:, W - 1 :, :, c4:c2]

    # H-shift groups: XLU roll + single boundary-row overwrite.
    if H > 1:
        o_ref[:, :, :, c2:c34] = pltpu.roll(x_ref[:, :, :, c2:c34], 1, axis=2)
    o_ref[:, :, :1, c2:c34] = x_ref[:, :, :1, c2:c34]
    if H > 1:
        o_ref[:, :, :, c34:] = pltpu.roll(x_ref[:, :, :, c34:], H - 1, axis=2)
    o_ref[:, :, H - 1 :, c34:] = x_ref[:, :, H - 1 :, c34:]


# --------------------------------------------------------------------------
# Wrapper
# --------------------------------------------------------------------------

def _vmem_budget_bytes():
    """Generation-aware usable scoped-VMEM budget (leaves 16 MiB headroom)."""
    cap = 64 << 20  # conservative default (valid on every generation)
    try:
        info = pltpu.get_tpu_info()
        cap = int(getattr(info, "vmem_capacity_bytes", cap))
    except Exception:
        pass
    return max(cap - (16 << 20), 32 << 20)


def _pick_channel_tile(c_group, per_channel_bytes, budget):
    """Largest multiple-of-128 divisor of c_group whose double-buffered
    in+out block (+ headroom) fits the VMEM budget. c_group % 128 == 0."""
    m = c_group // 128
    for d in range(m, 0, -1):
        if m % d:
            continue
        ct = 128 * d
        if 6 * ct * per_channel_bytes + (4 << 20) <= budget:
            return ct
    return 128  # smallest lane-dense tile; may still be tight for huge W*H


def spatial_shift(x, *, donate=False):
    """x: (B, W, H, C). Returns the spatially shifted array (same shape/dtype).

    donate=True aliases the output onto the input HBM buffer
    (input_output_aliases={0: 0}); safe because the tiling is halo-free
    (each grid step's input block equals its output block region).
    """
    B, W, H, C = x.shape
    assert C >= 4, "need at least 4 channels for the 4 shift groups"

    itemsize = x.dtype.itemsize
    budget = _vmem_budget_bytes()
    extra_kwargs = {"input_output_aliases": {0: 0}} if donate else {}

    c4 = C // 4
    lane_dense = (C % 4 == 0) and (c4 % 128 == 0)

    if lane_dense:
        # ---- Lane-dense per-group path --------------------------------
        c_tile = _pick_channel_tile(c4, W * H * itemsize, budget)
        n_ct = c4 // c_tile
        tile_bytes = W * H * c_tile * itemsize
        vmem_limit = int(min(max(6 * tile_bytes + (4 << 20), 32 << 20), budget))

        spec = pl.BlockSpec(
            (1, W, H, c_tile),
            lambda b, g, ct: (b, 0, 0, g * n_ct + ct),
        )
        return pl.pallas_call(
            _shift_group_kernel,
            out_shape=jax.ShapeDtypeStruct((B, W, H, C), x.dtype),
            grid_spec=pltpu.PrefetchScalarGridSpec(
                num_scalar_prefetch=0,
                grid=(B, 4, n_ct),
                in_specs=[spec],
                out_specs=spec,
            ),
            compiler_params=pltpu.CompilerParams(
                dimension_semantics=("parallel", "parallel", "parallel"),
                vmem_limit_bytes=vmem_limit,
            ),
            **extra_kwargs,
        )(x)

    # ---- Fallback path (small / irregular C) ---------------------------
    # TODO(synk): spatially tile the non-shifted axis per group family when
    # the whole-image block exceeds the VMEM budget (huge W*H with small C).
    block_bytes = W * H * C * itemsize
    vmem_limit = int(min(max(6 * block_bytes + (4 << 20), 32 << 20), budget))

    spec = pl.BlockSpec((1, W, H, C), lambda b: (b, 0, 0, 0))
    return pl.pallas_call(
        _spatial_shift_fallback_kernel,
        out_shape=jax.ShapeDtypeStruct((B, W, H, C), x.dtype),
        grid_spec=pltpu.PrefetchScalarGridSpec(
            num_scalar_prefetch=0,
            grid=(B,),
            in_specs=[spec],
            out_specs=spec,
        ),
        compiler_params=pltpu.CompilerParams(
            dimension_semantics=("parallel",),
            vmem_limit_bytes=vmem_limit,
        ),
        **extra_kwargs,
    )(x)


# --------------------------------------------------------------------------
# Pure-JAX reference (intended non-aliased shift semantics)
# --------------------------------------------------------------------------

def _spatial_shift_ref(x):
    B, W, H, C = x.shape
    c4, c2, c34 = C // 4, C // 2, 3 * C // 4
    g0, g1, g2, g3 = x[..., :c4], x[..., c4:c2], x[..., c2:c34], x[..., c34:]
    s0 = jnp.concatenate([g0[:, :1], g0[:, : W - 1]], axis=1)
    s1 = jnp.concatenate([g1[:, 1:], g1[:, W - 1 :]], axis=1)
    s2 = jnp.concatenate([g2[:, :, :1], g2[:, :, : H - 1]], axis=2)
    s3 = jnp.concatenate([g3[:, :, 1:], g3[:, :, H - 1 :]], axis=2)
    return jnp.concatenate([s0, s1, s2, s3], axis=-1)


if __name__ == "__main__":
    key = jax.random.PRNGKey(0)

    # Small shape consistent with the module (b, w, h, c), C//4 not a multiple
    # of 128 -> exercises the fallback whole-image kernel.
    x_small = jax.random.normal(key, (2, 16, 16, 32), dtype=jnp.float32)
    out_small = spatial_shift(x_small)
    jax.block_until_ready(out_small)
    assert out_small.shape == x_small.shape and out_small.dtype == x_small.dtype
    assert jnp.allclose(out_small, _spatial_shift_ref(x_small)), \
        "fallback-path mismatch vs reference"

    # Lane-dense shape (C//4 == 128) -> exercises the per-group grid kernel.
    x_big = jax.random.normal(jax.random.PRNGKey(0), (2, 8, 16, 512),
                              dtype=jnp.float32)
    out_big = spatial_shift(x_big)
    jax.block_until_ready(out_big)
    assert out_big.shape == x_big.shape and out_big.dtype == x_big.dtype
    assert jnp.allclose(out_big, _spatial_shift_ref(x_big)), \
        "lane-dense-path mismatch vs reference"

    print("KERNEL_OK")
</pallas_src>

<mosaic_0001>
module attributes {stable_mosaic.version = 11 : i64} {
  func.func @_spatial_shift_fallback_kernel(%arg0: i32, %arg1: memref<1x16x16x32xf32, #tpu.memory_space<vmem>>, %arg2: memref<1x16x16x32xf32, #tpu.memory_space<vmem>>) attributes {dimension_semantics = [#tpu.dimension_semantics<parallel>], iteration_bounds = array<i64: 2>, scalar_prefetch = 0 : i64, scratch_operands = 0 : i64, tpu.core_type = #tpu.core_type<tc>, window_params = [{transform_indices = @transform_0, window_bounds = array<i64: 1, 16, 16, 32>}, {transform_indices = @transform_1, window_bounds = array<i64: 1, 16, 16, 32>}]} {
    %c0 = arith.constant 0 : index
    %c0_0 = arith.constant 0 : index
    %c0_1 = arith.constant 0 : index
    %c0_2 = arith.constant 0 : index
    %0 = vector.load %arg1[%c0, %c0_0, %c0_1, %c0_2] : memref<1x16x16x32xf32, #tpu.memory_space<vmem>>, vector<1x15x16x8xf32>
    %c0_3 = arith.constant 0 : index
    %c1 = arith.constant 1 : index
    %c0_4 = arith.constant 0 : index
    %c0_5 = arith.constant 0 : index
    %1 = vector.load %arg2[%c0_3, %c1, %c0_4, %c0_5] : memref<1x16x16x32xf32, #tpu.memory_space<vmem>>, vector<1x15x16x8xf32>
    tpu.vector_store %arg2[%c0_3, %c1, %c0_4, %c0_5], %0 {strides = array<i32>} : memref<1x16x16x32xf32, #tpu.memory_space<vmem>>, vector<1x15x16x8xf32>,
    %c0_6 = arith.constant 0 : index
    %c0_7 = arith.constant 0 : index
    %c0_8 = arith.constant 0 : index
    %c0_9 = arith.constant 0 : index
    %2 = vector.load %arg1[%c0_6, %c0_7, %c0_8, %c0_9] : memref<1x16x16x32xf32, #tpu.memory_space<vmem>>, vector<1x1x16x8xf32>
    %c0_10 = arith.constant 0 : index
    %c0_11 = arith.constant 0 : index
    %c0_12 = arith.constant 0 : index
    %c0_13 = arith.constant 0 : index
    %3 = vector.load %arg2[%c0_10, %c0_11, %c0_12, %c0_13] : memref<1x16x16x32xf32, #tpu.memory_space<vmem>>, vector<1x1x16x8xf32>
    tpu.vector_store %arg2[%c0_10, %c0_11, %c0_12, %c0_13], %2 {strides = array<i32>} : memref<1x16x16x32xf32, #tpu.memory_space<vmem>>, vector<1x1x16x8xf32>,
    %c0_14 = arith.constant 0 : index
    %c1_15 = arith.constant 1 : index
    %c0_16 = arith.constant 0 : index
    %c8 = arith.constant 8 : index
    %4 = vector.load %arg1[%c0_14, %c1_15, %c0_16, %c8] : memref<1x16x16x32xf32, #tpu.memory_space<vmem>>, vector<1x15x16x8xf32>
    %c0_17 = arith.constant 0 : index
    %c0_18 = arith.constant 0 : index
    %c0_19 = arith.constant 0 : index
    %c8_20 = arith.constant 8 : index
    %5 = vector.load %arg2[%c0_17, %c0_18, %c0_19, %c8_20] : memref<1x16x16x32xf32, #tpu.memory_space<vmem>>, vector<1x15x16x8xf32>
    tpu.vector_store %arg2[%c0_17, %c0_18, %c0_19, %c8_20], %4 {strides = array<i32>} : memref<1x16x16x32xf32, #tpu.memory_space<vmem>>, vector<1x15x16x8xf32>,
    %c0_21 = arith.constant 0 : index
    %c15 = arith.constant 15 : index
    %c0_22 = arith.constant 0 : index
    %c8_23 = arith.constant 8 : index
    %6 = vector.load %arg1[%c0_21, %c15, %c0_22, %c8_23] : memref<1x16x16x32xf32, #tpu.memory_space<vmem>>, vector<1x1x16x8xf32>
    %c0_24 = arith.constant 0 : index
    %c15_25 = arith.constant 15 : index
    %c0_26 = arith.constant 0 : index
    %c8_27 = arith.constant 8 : index
    %7 = vector.load %arg2[%c0_24, %c15_25, %c0_26, %c8_27] : memref<1x16x16x32xf32, #tpu.memory_space<vmem>>, vector<1x1x16x8xf32>
    tpu.vector_store %arg2[%c0_24, %c15_25, %c0_26, %c8_27], %6 {strides = array<i32>} : memref<1x16x16x32xf32, #tpu.memory_space<vmem>>, vector<1x1x16x8xf32>,
    %c0_28 = arith.constant 0 : index
    %c0_29 = arith.constant 0 : index
    %c0_30 = arith.constant 0 : index
    %c16 = arith.constant 16 : index
    %8 = vector.load %arg1[%c0_28, %c0_29, %c0_30, %c16] : memref<1x16x16x32xf32, #tpu.memory_space<vmem>>, vector<1x16x16x8xf32>
    %c1_i32 = arith.constant 1 : i32
    %9 = tpu.dynamic_rotate %8 by %c1_i32 dim 2 : vector<1x16x16x8xf32>, i32 -> vector<1x16x16x8xf32>
    %c0_31 = arith.constant 0 : index
    %c0_32 = arith.constant 0 : index
    %c0_33 = arith.constant 0 : index
    %c16_34 = arith.constant 16 : index
    %10 = vector.load %arg2[%c0_31, %c0_32, %c0_33, %c16_34] : memref<1x16x16x32xf32, #tpu.memory_space<vmem>>, vector<1x16x16x8xf32>
    tpu.vector_store %arg2[%c0_31, %c0_32, %c0_33, %c16_34], %9 {strides = array<i32>} : memref<1x16x16x32xf32, #tpu.memory_space<vmem>>, vector<1x16x16x8xf32>,
    %c0_35 = arith.constant 0 : index
    %c0_36 = arith.constant 0 : index
    %c0_37 = arith.constant 0 : index
    %c16_38 = arith.constant 16 : index
    %11 = vector.load %arg1[%c0_35, %c0_36, %c0_37, %c16_38] : memref<1x16x16x32xf32, #tpu.memory_space<vmem>>, vector<1x16x1x8xf32>
    %c0_39 = arith.constant 0 : index
    %c0_40 = arith.constant 0 : index
    %c0_41 = arith.constant 0 : index
    %c16_42 = arith.constant 16 : index
    %12 = vector.load %arg2[%c0_39, %c0_40, %c0_41, %c16_42] : memref<1x16x16x32xf32, #tpu.memory_space<vmem>>, vector<1x16x1x8xf32>
    tpu.vector_store %arg2[%c0_39, %c0_40, %c0_41, %c16_42], %11 {strides = array<i32>} : memref<1x16x16x32xf32, #tpu.memory_space<vmem>>, vector<1x16x1x8xf32>,
    %c0_43 = arith.constant 0 : index
    %c0_44 = arith.constant 0 : index
    %c0_45 = arith.constant 0 : index
    %c24 = arith.constant 24 : index
    %13 = vector.load %arg1[%c0_43, %c0_44, %c0_45, %c24] : memref<1x16x16x32xf32, #tpu.memory_space<vmem>>, vector<1x16x16x8xf32>
    %c15_i32 = arith.constant 15 : i32
    %14 = tpu.dynamic_rotate %13 by %c15_i32 dim 2 : vector<1x16x16x8xf32>, i32 -> vector<1x16x16x8xf32>
    %c0_46 = arith.constant 0 : index
    %c0_47 = arith.constant 0 : index
    %c0_48 = arith.constant 0 : index
    %c24_49 = arith.constant 24 : index
    %15 = vector.load %arg2[%c0_46, %c0_47, %c0_48, %c24_49] : memref<1x16x16x32xf32, #tpu.memory_space<vmem>>, vector<1x16x16x8xf32>
    tpu.vector_store %arg2[%c0_46, %c0_47, %c0_48, %c24_49], %14 {strides = array<i32>} : memref<1x16x16x32xf32, #tpu.memory_space<vmem>>, vector<1x16x16x8xf32>,
    %c0_50 = arith.constant 0 : index
    %c0_51 = arith.constant 0 : index
    %c15_52 = arith.constant 15 : index
    %c24_53 = arith.constant 24 : index
    %16 = vector.load %arg1[%c0_50, %c0_51, %c15_52, %c24_53] : memref<1x16x16x32xf32, #tpu.memory_space<vmem>>, vector<1x16x1x8xf32>
    %c0_54 = arith.constant 0 : index
    %c0_55 = arith.constant 0 : index
    %c15_56 = arith.constant 15 : index
    %c24_57 = arith.constant 24 : index
    %17 = vector.load %arg2[%c0_54, %c0_55, %c15_56, %c24_57] : memref<1x16x16x32xf32, #tpu.memory_space<vmem>>, vector<1x16x1x8xf32>
    tpu.vector_store %arg2[%c0_54, %c0_55, %c15_56, %c24_57], %16 {strides = array<i32>} : memref<1x16x16x32xf32, #tpu.memory_space<vmem>>, vector<1x16x1x8xf32>,
    return
  }
  func.func @transform_0(%arg0: i32) -> (i32, i32, i32, i32) {
    %c0_i32 = arith.constant 0 : i32
    %c0_i32_0 = arith.constant 0 : i32
    %c0_i32_1 = arith.constant 0 : i32
    %c0_i32_2 = arith.constant 0 : i32
    return %arg0, %c0_i32, %c0_i32_0, %c0_i32_1 : i32, i32, i32, i32
  }
  func.func @transform_1(%arg0: i32) -> (i32, i32, i32, i32) {
    %c0_i32 = arith.constant 0 : i32
    %c0_i32_0 = arith.constant 0 : i32
    %c0_i32_1 = arith.constant 0 : i32
    %c0_i32_2 = arith.constant 0 : i32
    return %arg0, %c0_i32, %c0_i32_0, %c0_i32_1 : i32, i32, i32, i32
  }
}

</mosaic_0001>

<bundles_post_ra>
// kernel: tpu_custom_call.1
= control target key start
LH: loop header
LB: loop body
LE: loop exit
PB: predicated region body
PF: predicated region fallthrough
CT: control target
= control target key end

     0   :  { %6 = vsyncpa [#allocation3], 0  ;;  %s2543_s0 = inlined_call_operand.hbm [shape: f32[2,16,16,32], index: 0, kind: input, shape index: {}]   ;;  %s2544_s1 = inlined_call_operand.hbm [shape: f32[2,16,16,32], index: 1, kind: output, shape index: {}]  }
   0x1   :  { %8 = vsyncpa [#allocation3 + $0x1], 0 }
   0x2   :  { %9 = vsyncpa [#allocation4], 0 }
   0x3   :  { %11 = vsyncpa [#allocation4 + $0x1], 0  ;;  %s1444_s6 = smov 0   ;;  %s1446_s7 = smov 0  }
   0x4   :  { %s1448_s8 = smov 0   ;;  %s1450_s9 = smov 0  }
   0x5 LB: > { %s1465_s10 = sadd.s32 4294967295, %s1422_s9   ;;  %s1196_s11 = sadd.s32 4294967294, %s1422_s9   ;;  %s1422_s9 = sphi %s1450_s9, %s2559_s9   ;;  %s1418_s8 = sphi %s1448_s8, %s2558_s8   ;;  %s1414_s7 = sphi %s1446_s7, %s2557_s7   ;;  %s1410_s6 = sphi %s1444_s6, %s2556_s6  }
   0x6   : > { %s1469_s12 = sadd.s32 1, %s1422_s9   ;;  %s24_s13 = sadd.s32 1, %s1418_s8 }
   0x7   : > { %s21_s14 = ssub.s32 %s1422_s9, %s1469_s12  ;;  %p31_p0 = scmp.ne.s32.totalorder %s1418_s8, %s1414_s7 }
   0x8   : > { %p22_p1 = scmp.eq.s32.totalorder %s21_s14, 0  ;;  %p32_p2 = scmp.eq.s32.totalorder %s1422_s9, 0 }
   0x9   : > { %p37_p3 = scmp.ne.s32.totalorder %s1414_s7, %s1410_s6  ;;  %p38_p4 = scmp.eq.s32.totalorder %s1465_s10, 0 }
   0xa   : > { %s1481_s15 = scalar_select %p22_p1, %s1418_s8, %s24_s13  }
   0xb   : > { %p1483_p5 = por %p32_p2, %p31_p0  ;;  %p1487_p6 = por %p38_p4, %p37_p3 }
   0xc   : > { %p61_p7 = scmp.eq.s32.totalorder %s1465_s10, 1  ;;  %p67_p8 = scmp.eq.s32.totalorder %s1196_s11, 1 }
   0xd   : > { %s2548_s17 = scalar_select %p1487_p6, 1, 0 }
   0xe   : > { %p1288_p10 = scmp.lt.s32.totalorder %s1422_s9, 2  ;;  %p1494_p11 = por %p61_p7, %p31_p0 }
   0xf   : > { %p1498_p12 = por %p67_p8, %p37_p3  ;;  %s87_s20 = sand.u32 1, %s1418_s8  }
  0x10   : > { %s2549_s18 = scalar_select %p1494_p11, 1, 0 }
  0x11   : > { %s2550_s19 = scalar_select %p1498_p12, 1, 0 }
  0x12   : > { %s1274_s21 = sshll.u32 %s1422_s9, 12  ;;  %s1199_s22 = sshll.u32 %s87_s20, 8 }
  0x13   : > { %s1507_s25 = scalar_lea.hbm %s2543_s0, %s1274_s21  ;;  %s91_s26 = scalar_lea.vmem [#allocation2], %s1199_s22 }
  0x14   : > { %s98_s27 = sshll.u32 %s91_s26, 4  ;;  %p1511_p13 = pnand %p1288_p10, %p1483_p5  ;;  %s1515_s27 = int_to_ptr.vmem [resolvable:$true] %s98_s27 }
  0x15   : > { %s1517_s29 = scalar_lea.sflag [#allocation3], %s87_s20  ;;  %s1330_s30 = scalar_lea.hbm %s1507_s25, 4096 }
  0x16   : > { %p1331_p0 = scmp.ne.s32.totalorder %s1507_s25, %s1330_s30  ;;  %p1332_p1 = pneg %p1511_p13 }
  0x17   : > { %s1335_s4 = scalar_lea.hbm %s2543_s0, 8192  ;;  %p1336_p4 = scmp.lt.s32.totalorder %s1507_s25, %s2543_s0 }
  0x18   : > { %p1333_p2 = pnand %p1332_p1, %p1331_p0  ;;  %p1337_p5 = scmp.lt.s32.totalorder %s1335_s4, %s1330_s30 }
  0x1a   : > { %p1334_p3 = pneg %p1333_p2  ;;  %p1338_p7 = por %p1337_p5, %p1336_p4 }
  0x1c   : > { %p1339_p8 = pnand %p1338_p7, %p1334_p3 }
  0x1e   : > { %1342 = shalt.err (!%p1339_p8)
}
  0x1f   : > { %s1343_s13 = scalar_lea.vmem %s1515_s27, 4096  ;;  %s1424_s14 = smov [#allocation2]  }
  0x20   : > { %p1344_p10 = scmp.ne.s32.totalorder %s1515_s27, %s1343_s13  ;;  %s1348_s16 = sshll.u32 %s1424_s14, 4  ;;  %s1349_s16 = int_to_ptr.vmem [resolvable:$false] %s1348_s16 }
  0x21   : > { %s1350_s20 = scalar_lea.vmem %s1349_s16, 8192  ;;  %p1351_p2 = scmp.lt.s32.totalorder %s1515_s27, %s1349_s16 }
  0x22   : > { %p1346_p9 = pnand %p1344_p10, %p1332_p1  ;;  %p1352_p12 = scmp.lt.s32.totalorder %s1350_s20, %s1343_s13 }
  0x24   : > { %p1347_p0 = pneg %p1346_p9  ;;  %p1353_p11 = por %p1352_p12, %p1351_p2 }
  0x26   : > { %p1354_p6 = pnand %p1353_p11, %p1347_p0 }
  0x28   : > { %1357 = shalt.err (!%p1354_p6)
}
  0x29   : > { %s1425_s21 = smov 128   ;;  %s1426_s22 = smov 8  }
  0x2a   : > { %1283 = dma.hbm_to_vmem [thread:$0]  (!%p1511_p13), %s1507_s25, 4096, %s1515_s27, %s1517_s29, %s1425_s21, %s1425_s21, %s1426_s22  }
  0x2b   : > { %p1202_p9 = scmp.ge.s32.totalorder %s1422_s9, 1  ;;  %p106_p1 = scmp.lt.s32.totalorder %s1422_s9, 3 }
  0x2d   : > { %p107_p3 = pnand %p1202_p9, %p106_p1 }
  0x2e   : > { %s1541_s23 = sand.u32 (!%p107_p3), 1, %s1414_s7   ;;  %p2552_p6 = scmp.ne.s32.totalorder (!%p107_p3), %s2548_s17, 0 }
  0x2f   : > { %110 = sbr.rel (%p107_p3) target bundleno = 575 (0x23f), region = 24  ;;  %s1203_s24 = sshll.u32 (!%p107_p3), %s1541_s23, 8 }
  0x30   : > { %s113_s26 = scalar_lea.sflag (!%p107_p3), [#allocation3], %s1541_s23  ;;  %s1547_s30 = scalar_lea.vmem (!%p107_p3), [#allocation2], %s1203_s24 }
  0x34   : > { %1401 = dma.done.wait (%p2552_p6), %s113_s26, 4096  }
  0x35   : > { %1403 = vsyncadd (%p2552_p6), %s113_s26, 4294963200  ;;  %v1554_v0 = vld [vmem:[%s1547_s30 + $0x10] sm:$0xff]  ;;  %v1557_v1 = vld [vmem:[%s1547_s30] sm:$0xff]  ;;  %s1427_s25 = smov 112   ;;  %vm166_vm0 = vcmask 64512   ;;  %vm232_vm1 = vcmask 130112   ;;  %v461_v32 = vlaneseq }
  0x36   : > { %337 = vrot.lane.b32.xlu1 %v1554_v0, %s1427_s25  ;;  %333 = vrot.lane.b32.xlu0 %v1557_v1, %s1427_s25  ;;  %v1564_v2 = vld [vmem:[%s1547_s30 + $0x18] sm:$0xff]  ;;  %v1567_v3 = vld [vmem:[%s1547_s30 + $0x8] sm:$0xff]  ;;  %s1715_s17 = scalar_lea.vmem [#allocation5], %s1203_s24  ;;  %s1428_s27 = smov 16   ;;  %vm624_vm3 = vcmask 195712   ;;  %vm673_vm4 = vcmask 188544  }
  0x37   : > { %v1574_v4 = vld [vmem:[%s1547_s30 + $0x28] sm:$0xff]  ;;  %v1577_v5 = vld [vmem:[%s1547_s30 + $0x20] sm:$0xff]  ;;  %v1584_v6 = vld [vmem:[%s1547_s30 + $0x38] sm:$0xff]  ;;  %200 = vst.msk [vmem:[%s1715_s17 + $0x8] sm:$0xff] %vm166_vm0, %v1567_v3  ;;  %v1909_v35 = vshrl.u32 %v461_v32, 7  ;;  %s1429_s28 = smov 104  }
  0x38   : > { %v1587_v7 = vld [vmem:[%s1547_s30 + $0x30] sm:$0xff]  ;;  %v1594_v8 = vld [vmem:[%s1547_s30 + $0x48] sm:$0xff]  ;;  %v1597_v9 = vld [vmem:[%s1547_s30 + $0x40] sm:$0xff]  ;;  %199 = vst.msk [vmem:[%s1715_s17] sm:$0xff] %vm166_vm0, %v1557_v1  ;;  %s1430_s29 = smov 24   ;;  %vm1043_vm6 = vcmask 261312  }
  0x39   : > { %v1604_v10 = vld [vmem:[%s1547_s30 + $0x58] sm:$0xff]  ;;  %v1607_v11 = vld [vmem:[%s1547_s30 + $0x50] sm:$0xff]  ;;  %v1614_v12 = vld [vmem:[%s1547_s30 + $0x68] sm:$0xff]  ;;  %1206 = vst.msk [vmem:[%s1715_s17 + $0x18] sm:$0xff] %vm166_vm0, %v1567_v3  ;;  %vm463_vm2 = vcmp.lt.s32.totalorder %v1909_v35, 1  ;;  %vm882_vm5 = vcmp.lt.s32.totalorder %v1909_v35, 7 }
  0x3a   : > { %339 = vrot.lane.b32.xlu1 %v1564_v2, %s1427_s25  ;;  %335 = vrot.lane.b32.xlu0 %v1567_v3, %s1427_s25  ;;  %v1617_v13 = vld [vmem:[%s1547_s30 + $0x60] sm:$0xff]  ;;  %v1624_v14 = vld [vmem:[%s1547_s30 + $0x78] sm:$0xff]  ;;  %vm1092_vm7 = vcmask 254144   ;;  %s1275_s2 = sshll.u32 %s1465_s10, 12  ;;  %s1123_s3 = sshll.u32 %s1715_s17, 4  ;;  %s2496_s3 = int_to_ptr.vmem [resolvable:$true] %s1123_s3 }
  0x3b   : > { %v1627_v15 = vld [vmem:[%s1547_s30 + $0x70] sm:$0xff]  ;;  %v1634_v16 = vld [vmem:[%s1547_s30 + $0x88] sm:$0xff]  ;;  %v1637_v17 = vld [vmem:[%s1547_s30 + $0x80] sm:$0xff]  ;;  %1205 = vst.msk [vmem:[%s1715_s17 + $0x10] sm:$0xff] %vm166_vm0, %v1557_v1  ;;  %s2494_s11 = scalar_lea.hbm %s2544_s1, %s1275_s2  ;;  %s1110_s10 = scalar_lea.sflag [#allocation4], %s1541_s23 }
  0x3c   : > { %v1644_v18 = vld [vmem:[%s1547_s30 + $0x98] sm:$0xff]  ;;  %v1647_v19 = vld [vmem:[%s1547_s30 + $0x90] sm:$0xff]  ;;  %v1654_v20 = vld [vmem:[%s1547_s30 + $0xa8] sm:$0xff]  ;;  %1208 = vst.msk [vmem:[%s1715_s17 + $0x28] sm:$0xff] %vm166_vm0, %v1564_v2  ;;  %s1358_s13 = scalar_lea.vmem %s2496_s3, 4096  ;;  %p2553_p12 = scmp.ne.s32.totalorder %s2549_s18, 0 }
  0x3d   : > { %v1657_v21 = vld [vmem:[%s1547_s30 + $0xa0] sm:$0xff]  ;;  %v1664_v22 = vld [vmem:[%s1547_s30 + $0xb8] sm:$0xff]  ;;  %v1667_v23 = vld [vmem:[%s1547_s30 + $0xb0] sm:$0xff]  ;;  %1207 = vst.msk [vmem:[%s1715_s17 + $0x20] sm:$0xff] %vm166_vm0, %v1554_v0  ;;  %p1359_p11 = scmp.ne.s32.totalorder %s2496_s3, %s1358_s13  ;;  %s1431_s14 = smov [#allocation5]  }
  0x3e   : > { %343 = vrot.lane.b32.xlu1 %v1574_v4, %s1427_s25  ;;  %341 = vrot.lane.b32.xlu0 %v1577_v5, %s1427_s25  ;;  %v1674_v24 = vld [vmem:[%s1547_s30 + $0xc8] sm:$0xff]  ;;  %v1677_v25 = vld [vmem:[%s1547_s30 + $0xc0] sm:$0xff]  ;;  %s1362_s16 = sshll.u32 %s1431_s14, 4  ;;  %s1363_s16 = int_to_ptr.vmem [resolvable:$false] %s1362_s16 }
  0x3f   : > { %v1684_v26 = vld [vmem:[%s1547_s30 + $0xd8] sm:$0xff]  ;;  %v1687_v27 = vld [vmem:[%s1547_s30 + $0xd0] sm:$0xff]  ;;  %v1694_v28 = vld [vmem:[%s1547_s30 + $0xe8] sm:$0xff]  ;;  %1210 = vst.msk [vmem:[%s1715_s17 + $0x38] sm:$0xff] %vm166_vm0, %v1574_v4  ;;  %p1360_p13 = pnand %p1359_p11, %p2553_p12  ;;  %s1364_s20 = scalar_lea.vmem %s1363_s16, 8192 }
  0x40   : > { %v1697_v29 = vld [vmem:[%s1547_s30 + $0xe0] sm:$0xff]  ;;  %v1704_v30 = vld [vmem:[%s1547_s30 + $0xf8] sm:$0xff]  ;;  %v1707_v31 = vld [vmem:[%s1547_s30 + $0xf0] sm:$0xff]  ;;  %1209 = vst.msk [vmem:[%s1715_s17 + $0x30] sm:$0xff] %vm166_vm0, %v1577_v5  ;;  %p1365_p5 = scmp.lt.s32.totalorder %s2496_s3, %s1363_s16  ;;  %p1366_p7 = scmp.lt.s32.totalorder %s1364_s20, %s1358_s13 }
  0x41   : > { %1212 = vst.msk [vmem:[%s1715_s17 + $0x48] sm:$0xff] %vm166_vm0, %v1584_v6  ;;  %1211 = vst.msk [vmem:[%s1715_s17 + $0x40] sm:$0xff] %vm166_vm0, %v1587_v7  ;;  %v1077_v35 = vld [vmem:[%s1547_s30 + $0x1f] sm:$0x1]  ;;  %p1361_p4 = pneg %p1360_p13 }
  0x42   : > { %347 = vrot.lane.b32.xlu1 %v1584_v6, %s1427_s25  ;;  %345 = vrot.lane.b32.xlu0 %v1587_v7, %s1427_s25  ;;  %1214 = vst.msk [vmem:[%s1715_s17 + $0x58] sm:$0xff] %vm166_vm0, %v1594_v8  ;;  %1213 = vst.msk [vmem:[%s1715_s17 + $0x50] sm:$0xff] %vm166_vm0, %v1597_v9  ;;  %p1367_p8 = por %p1366_p7, %p1365_p5 }
  0x43   : > { %1216 = vst.msk [vmem:[%s1715_s17 + $0x68] sm:$0xff] %vm166_vm0, %v1604_v10  ;;  %1215 = vst.msk [vmem:[%s1715_s17 + $0x60] sm:$0xff] %vm166_vm0, %v1607_v11 }
  0x44   : > { %1218 = vst.msk [vmem:[%s1715_s17 + $0x78] sm:$0xff] %vm166_vm0, %v1614_v12  ;;  %1217 = vst.msk [vmem:[%s1715_s17 + $0x70] sm:$0xff] %vm166_vm0, %v1617_v13  ;;  %p1368_p10 = pnand %p1367_p8, %p1361_p4 }
  0x45   : > { %1220 = vst.msk [vmem:[%s1715_s17 + $0x88] sm:$0xff] %vm166_vm0, %v1624_v14  ;;  %1219 = vst.msk [vmem:[%s1715_s17 + $0x80] sm:$0xff] %vm166_vm0, %v1627_v15 }
  0x46   : > { %351 = vrot.lane.b32.xlu1 %v1594_v8, %s1427_s25  ;;  %349 = vrot.lane.b32.xlu0 %v1597_v9, %s1427_s25  ;;  %1222 = vst.msk [vmem:[%s1715_s17 + $0x98] sm:$0xff] %vm166_vm0, %v1634_v16  ;;  %1221 = vst.msk [vmem:[%s1715_s17 + $0x90] sm:$0xff] %vm166_vm0, %v1637_v17 }
  0x47   : > { %1224 = vst.msk [vmem:[%s1715_s17 + $0xa8] sm:$0xff] %vm166_vm0, %v1644_v18  ;;  %1223 = vst.msk [vmem:[%s1715_s17 + $0xa0] sm:$0xff] %vm166_vm0, %v1647_v19 }
  0x48   : > { %1226 = vst.msk [vmem:[%s1715_s17 + $0xb8] sm:$0xff] %vm166_vm0, %v1654_v20  ;;  %1225 = vst.msk [vmem:[%s1715_s17 + $0xb0] sm:$0xff] %vm166_vm0, %v1657_v21 }
  0x49   : > { %1228 = vst.msk [vmem:[%s1715_s17 + $0xc8] sm:$0xff] %vm166_vm0, %v1664_v22  ;;  %1227 = vst.msk [vmem:[%s1715_s17 + $0xc0] sm:$0xff] %vm166_vm0, %v1667_v23 }
  0x4a   : > { %355 = vrot.lane.b32.xlu1 %v1604_v10, %s1427_s25  ;;  %353 = vrot.lane.b32.xlu0 %v1607_v11, %s1427_s25  ;;  %1230 = vst.msk [vmem:[%s1715_s17 + $0xd8] sm:$0xff] %vm166_vm0, %v1674_v24  ;;  %1229 = vst.msk [vmem:[%s1715_s17 + $0xd0] sm:$0xff] %vm166_vm0, %v1677_v25 }
  0x4b   : > { %1232 = vst.msk [vmem:[%s1715_s17 + $0xe8] sm:$0xff] %vm166_vm0, %v1684_v26  ;;  %1231 = vst.msk [vmem:[%s1715_s17 + $0xe0] sm:$0xff] %vm166_vm0, %v1687_v27 }
  0x4c   : > { %1234 = vst.msk [vmem:[%s1715_s17 + $0xf8] sm:$0xff] %vm166_vm0, %v1694_v28  ;;  %1233 = vst.msk [vmem:[%s1715_s17 + $0xf0] sm:$0xff] %vm166_vm0, %v1697_v29 }
  0x4d   : > { %234 = vst.msk [vmem:[%s1715_s17 + $0x8] sm:$0xff] %vm232_vm1, %v1564_v2  ;;  %233 = vst.msk [vmem:[%s1715_s17] sm:$0xff] %vm232_vm1, %v1554_v0 }
  0x4e   : > { %359 = vrot.lane.b32.xlu1 %v1614_v12, %s1427_s25  ;;  %357 = vrot.lane.b32.xlu0 %v1617_v13, %s1427_s25  ;;  %236 = vst.msk [vmem:[%s1715_s17 + $0x18] sm:$0xff] %vm232_vm1, %v1574_v4  ;;  %235 = vst.msk [vmem:[%s1715_s17 + $0x10] sm:$0xff] %vm232_vm1, %v1577_v5 }
  0x4f   : > { %238 = vst.msk [vmem:[%s1715_s17 + $0x28] sm:$0xff] %vm232_vm1, %v1584_v6  ;;  %237 = vst.msk [vmem:[%s1715_s17 + $0x20] sm:$0xff] %vm232_vm1, %v1587_v7 }
  0x50   : > { %240 = vst.msk [vmem:[%s1715_s17 + $0x38] sm:$0xff] %vm232_vm1, %v1594_v8  ;;  %239 = vst.msk [vmem:[%s1715_s17 + $0x30] sm:$0xff] %vm232_vm1, %v1597_v9 }
  0x51   : > { %242 = vst.msk [vmem:[%s1715_s17 + $0x48] sm:$0xff] %vm232_vm1, %v1604_v10  ;;  %241 = vst.msk [vmem:[%s1715_s17 + $0x40] sm:$0xff] %vm232_vm1, %v1607_v11 }
  0x52   : > { %363 = vrot.lane.b32.xlu1 %v1624_v14, %s1427_s25  ;;  %361 = vrot.lane.b32.xlu0 %v1627_v15, %s1427_s25  ;;  %244 = vst.msk [vmem:[%s1715_s17 + $0x58] sm:$0xff] %vm232_vm1, %v1614_v12  ;;  %243 = vst.msk [vmem:[%s1715_s17 + $0x50] sm:$0xff] %vm232_vm1, %v1617_v13 }
  0x53   : > { %246 = vst.msk [vmem:[%s1715_s17 + $0x68] sm:$0xff] %vm232_vm1, %v1624_v14  ;;  %245 = vst.msk [vmem:[%s1715_s17 + $0x60] sm:$0xff] %vm232_vm1, %v1627_v15 }
  0x54   : > { %248 = vst.msk [vmem:[%s1715_s17 + $0x78] sm:$0xff] %vm232_vm1, %v1634_v16  ;;  %247 = vst.msk [vmem:[%s1715_s17 + $0x70] sm:$0xff] %vm232_vm1, %v1637_v17 }
  0x55   : > { %250 = vst.msk [vmem:[%s1715_s17 + $0x88] sm:$0xff] %vm232_vm1, %v1644_v18  ;;  %249 = vst.msk [vmem:[%s1715_s17 + $0x80] sm:$0xff] %vm232_vm1, %v1647_v19 }
  0x56   : > { %367 = vrot.lane.b32.xlu1 %v1634_v16, %s1427_s25  ;;  %365 = vrot.lane.b32.xlu0 %v1637_v17, %s1427_s25  ;;  %252 = vst.msk [vmem:[%s1715_s17 + $0x98] sm:$0xff] %vm232_vm1, %v1654_v20  ;;  %251 = vst.msk [vmem:[%s1715_s17 + $0x90] sm:$0xff] %vm232_vm1, %v1657_v21 }
  0x57   : > { %254 = vst.msk [vmem:[%s1715_s17 + $0xa8] sm:$0xff] %vm232_vm1, %v1664_v22  ;;  %253 = vst.msk [vmem:[%s1715_s17 + $0xa0] sm:$0xff] %vm232_vm1, %v1667_v23 }
  0x58   : > { %256 = vst.msk [vmem:[%s1715_s17 + $0xb8] sm:$0xff] %vm232_vm1, %v1674_v24  ;;  %255 = vst.msk [vmem:[%s1715_s17 + $0xb0] sm:$0xff] %vm232_vm1, %v1677_v25 }
  0x59   : > { %258 = vst.msk [vmem:[%s1715_s17 + $0xc8] sm:$0xff] %vm232_vm1, %v1684_v26  ;;  %257 = vst.msk [vmem:[%s1715_s17 + $0xc0] sm:$0xff] %vm232_vm1, %v1687_v27 }
  0x5a   : > { %371 = vrot.lane.b32.xlu1 %v1644_v18, %s1427_s25  ;;  %369 = vrot.lane.b32.xlu0 %v1647_v19, %s1427_s25  ;;  %260 = vst.msk [vmem:[%s1715_s17 + $0xd8] sm:$0xff] %vm232_vm1, %v1694_v28  ;;  %259 = vst.msk [vmem:[%s1715_s17 + $0xd0] sm:$0xff] %vm232_vm1, %v1697_v29 }
  0x5b   : > { %262 = vst.msk [vmem:[%s1715_s17 + $0xe8] sm:$0xff] %vm232_vm1, %v1704_v30  ;;  %261 = vst.msk [vmem:[%s1715_s17 + $0xe0] sm:$0xff] %vm232_vm1, %v1707_v31 }
  0x5c   : > { %1268 = vst.msk [vmem:[%s1715_s17 + $0xf8] sm:$0xff] %vm232_vm1, %v1704_v30  ;;  %1267 = vst.msk [vmem:[%s1715_s17 + $0xf0] sm:$0xff] %vm232_vm1, %v1707_v31 }
  0x5e   : > { %375 = vrot.lane.b32.xlu1 %v1654_v20, %s1427_s25  ;;  %373 = vrot.lane.b32.xlu0 %v1657_v21, %s1427_s25 }
  0x62   : > { %379 = vrot.lane.b32.xlu1 %v1664_v22, %s1427_s25  ;;  %377 = vrot.lane.b32.xlu0 %v1667_v23, %s1427_s25 }
  0x66   : > { %383 = vrot.lane.b32.xlu1 %v1674_v24, %s1427_s25  ;;  %381 = vrot.lane.b32.xlu0 %v1677_v25, %s1427_s25 }
  0x6a   : > { %387 = vrot.lane.b32.xlu1 %v1684_v26, %s1427_s25  ;;  %385 = vrot.lane.b32.xlu0 %v1687_v27, %s1427_s25 }
  0x6e   : > { %391 = vrot.lane.b32.xlu1 %v1694_v28, %s1427_s25  ;;  %389 = vrot.lane.b32.xlu0 %v1697_v29, %s1427_s25 }
  0x72   : > { %395 = vrot.lane.b32.xlu1 %v1704_v30, %s1427_s25  ;;  %393 = vrot.lane.b32.xlu0 %v1707_v31, %s1427_s25 }
  0xa8   : > { %v338_v33 = vpop.permute.xlu1 %337  ;;  %v334_v34 = vpop.permute.xlu0 %333 }
  0xa9   : > { %v429_v38 = vrot.slane %v334_v34, 7  ;;  %v430_v40 = vrot.slane %v338_v33, 7 }
  0xac   : > { %v340_v36 = vpop.permute.xlu1 %339  ;;  %v336_v37 = vpop.permute.xlu0 %335 }
  0xad   : > { %v445_v39 = vrot.slane %v336_v37, 7  ;;  %v446_v41 = vrot.slane %v340_v36, 7 }
  0xaf   : > { %v480_v42 = vsel %vm463_vm2, %v445_v39, %v429_v38  ;;  %v464_v43 = vsel %vm463_vm2, %v429_v38, %v445_v39  ;;  %v481_v48 = vsel %vm463_vm2, %v446_v41, %v430_v40  ;;  %v465_v49 = vsel %vm463_vm2, %v430_v40, %v446_v41 }
  0xb0   : > { %528 = vrot.lane.b32.xlu0 %v480_v42, %s1428_s27  ;;  %530 = vrot.lane.b32.xlu1 %v464_v43, %s1428_s27  ;;  %v344_v44 = vpop.permute.xlu1 %343  ;;  %v342_v45 = vpop.permute.xlu0 %341 }
  0xb1   : > { %v447_v46 = vrot.slane %v344_v44, 7  ;;  %v431_v47 = vrot.slane %v342_v45, 7 }
  0xb3   : > { %v482_v53 = vsel %vm463_vm2, %v447_v46, %v431_v47  ;;  %v466_v54 = vsel %vm463_vm2, %v431_v47, %v447_v46 }
  0xb4   : > { %532 = vrot.lane.b32.xlu0 %v481_v48, %s1428_s27  ;;  %534 = vrot.lane.b32.xlu1 %v465_v49, %s1428_s27  ;;  %v348_v50 = vpop.permute.xlu1 %347  ;;  %v346_v51 = vpop.permute.xlu0 %345 }
  0xb5   : > { %v448_v52 = vrot.slane %v348_v50, 7  ;;  %v432_v55 = vrot.slane %v346_v51, 7 }
  0xb7   : > { %v483_v59 = vsel %vm463_vm2, %v448_v52, %v432_v55  ;;  %v467_v60 = vsel %vm463_vm2, %v432_v55, %v448_v52 }
  0xb8   : > { %536 = vrot.lane.b32.xlu0 %v482_v53, %s1428_s27  ;;  %538 = vrot.lane.b32.xlu1 %v466_v54, %s1428_s27  ;;  %v352_v56 = vpop.permute.xlu1 %351  ;;  %v350_v57 = vpop.permute.xlu0 %349 }
  0xb9   : > { %v449_v58 = vrot.slane %v352_v56, 7  ;;  %v433_v61 = vrot.slane %v350_v57, 7 }
  0xbb   : > { %v484_v33 = vsel %vm463_vm2, %v449_v58, %v433_v61  ;;  %v468_v34 = vsel %vm463_vm2, %v433_v61, %v449_v58 }
  0xbc   : > { %540 = vrot.lane.b32.xlu0 %v483_v59, %s1428_s27  ;;  %542 = vrot.lane.b32.xlu1 %v467_v60, %s1428_s27  ;;  %v356_v62 = vpop.permute.xlu1 %355  ;;  %v354_v63 = vpop.permute.xlu0 %353 }
  0xbd   : > { %v450_v32 = vrot.slane %v356_v62, 7  ;;  %v434_v36 = vrot.slane %v354_v63, 7 }
  0xbf   : > { %v485_v40 = vsel %vm463_vm2, %v450_v32, %v434_v36  ;;  %v469_v41 = vsel %vm463_vm2, %v434_v36, %v450_v32 }
  0xc0   : > { %544 = vrot.lane.b32.xlu0 %v484_v33, %s1428_s27  ;;  %546 = vrot.lane.b32.xlu1 %v468_v34, %s1428_s27  ;;  %v360_v37 = vpop.permute.xlu1 %359  ;;  %v358_v38 = vpop.permute.xlu0 %357 }
  0xc1   : > { %v451_v39 = vrot.slane %v360_v37, 7  ;;  %v435_v42 = vrot.slane %v358_v38, 7 }
  0xc3   : > { %v486_v46 = vsel %vm463_vm2, %v451_v39, %v435_v42  ;;  %v470_v47 = vsel %vm463_vm2, %v435_v42, %v451_v39 }
  0xc4   : > { %548 = vrot.lane.b32.xlu0 %v485_v40, %s1428_s27  ;;  %550 = vrot.lane.b32.xlu1 %v469_v41, %s1428_s27  ;;  %v364_v43 = vpop.permute.xlu1 %363  ;;  %v362_v44 = vpop.permute.xlu0 %361 }
  0xc5   : > { %v452_v45 = vrot.slane %v364_v43, 7  ;;  %v436_v48 = vrot.slane %v362_v44, 7 }
  0xc7   : > { %v487_v52 = vsel %vm463_vm2, %v452_v45, %v436_v48  ;;  %v471_v53 = vsel %vm463_vm2, %v436_v48, %v452_v45 }
  0xc8   : > { %552 = vrot.lane.b32.xlu0 %v486_v46, %s1428_s27  ;;  %554 = vrot.lane.b32.xlu1 %v470_v47, %s1428_s27  ;;  %v368_v49 = vpop.permute.xlu1 %367  ;;  %v366_v50 = vpop.permute.xlu0 %365 }
  0xc9   : > { %v453_v51 = vrot.slane %v368_v49, 7  ;;  %v437_v54 = vrot.slane %v366_v50, 7 }
  0xcb   : > { %v488_v58 = vsel %vm463_vm2, %v453_v51, %v437_v54  ;;  %v472_v59 = vsel %vm463_vm2, %v437_v54, %v453_v51 }
  0xcc   : > { %556 = vrot.lane.b32.xlu0 %v487_v52, %s1428_s27  ;;  %558 = vrot.lane.b32.xlu1 %v471_v53, %s1428_s27  ;;  %v372_v55 = vpop.permute.xlu1 %371  ;;  %v370_v56 = vpop.permute.xlu0 %369 }
  0xcd   : > { %v454_v57 = vrot.slane %v372_v55, 7  ;;  %v438_v60 = vrot.slane %v370_v56, 7 }
  0xcf   : > { %v489_v32 = vsel %vm463_vm2, %v454_v57, %v438_v60  ;;  %v473_v33 = vsel %vm463_vm2, %v438_v60, %v454_v57 }
  0xd0   : > { %560 = vrot.lane.b32.xlu0 %v488_v58, %s1428_s27  ;;  %562 = vrot.lane.b32.xlu1 %v472_v59, %s1428_s27  ;;  %v376_v61 = vpop.permute.xlu1 %375  ;;  %v374_v62 = vpop.permute.xlu0 %373 }
  0xd1   : > { %v455_v63 = vrot.slane %v376_v61, 7  ;;  %v439_v34 = vrot.slane %v374_v62, 7 }
  0xd3   : > { %v490_v39 = vsel %vm463_vm2, %v455_v63, %v439_v34  ;;  %v474_v40 = vsel %vm463_vm2, %v439_v34, %v455_v63 }
  0xd4   : > { %564 = vrot.lane.b32.xlu0 %v489_v32, %s1428_s27  ;;  %566 = vrot.lane.b32.xlu1 %v473_v33, %s1428_s27  ;;  %v380_v36 = vpop.permute.xlu1 %379  ;;  %v378_v37 = vpop.permute.xlu0 %377 }
  0xd5   : > { %v456_v38 = vrot.slane %v380_v36, 7  ;;  %v440_v41 = vrot.slane %v378_v37, 7 }
  0xd7   : > { %v491_v45 = vsel %vm463_vm2, %v456_v38, %v440_v41  ;;  %v475_v46 = vsel %vm463_vm2, %v440_v41, %v456_v38  ;;  %v668_v38 = vld [vmem:[%s1547_s30 + $0xb0] sm:$0x1]  ;;  %v669_v41 = vld [vmem:[%s1547_s30 + $0xc0] sm:$0x1] }
  0xd8   : > { %568 = vrot.lane.b32.xlu0 %v490_v39, %s1428_s27  ;;  %570 = vrot.lane.b32.xlu1 %v474_v40, %s1428_s27  ;;  %v384_v42 = vpop.permute.xlu1 %383  ;;  %v382_v43 = vpop.permute.xlu0 %381 }
  0xd9   : > { %v457_v44 = vrot.slane %v384_v42, 7  ;;  %v441_v47 = vrot.slane %v382_v43, 7 }
  0xdb   : > { %v492_v51 = vsel %vm463_vm2, %v457_v44, %v441_v47  ;;  %v476_v52 = vsel %vm463_vm2, %v441_v47, %v457_v44  ;;  %v670_v44 = vld [vmem:[%s1547_s30 + $0xd0] sm:$0x1]  ;;  %v671_v47 = vld [vmem:[%s1547_s30 + $0xe0] sm:$0x1] }
  0xdc   : > { %572 = vrot.lane.b32.xlu0 %v491_v45, %s1428_s27  ;;  %574 = vrot.lane.b32.xlu1 %v475_v46, %s1428_s27  ;;  %v388_v48 = vpop.permute.xlu1 %387  ;;  %v386_v49 = vpop.permute.xlu0 %385 }
  0xdd   : > { %v458_v50 = vrot.slane %v388_v48, 7  ;;  %v442_v53 = vrot.slane %v386_v49, 7 }
  0xdf   : > { %v493_v57 = vsel %vm463_vm2, %v458_v50, %v442_v53  ;;  %v477_v58 = vsel %vm463_vm2, %v442_v53, %v458_v50  ;;  %v672_v50 = vld [vmem:[%s1547_s30 + $0xf0] sm:$0x1] }
  0xe0   : > { %576 = vrot.lane.b32.xlu0 %v492_v51, %s1428_s27  ;;  %578 = vrot.lane.b32.xlu1 %v476_v52, %s1428_s27  ;;  %v392_v54 = vpop.permute.xlu1 %391  ;;  %v390_v55 = vpop.permute.xlu0 %389 }
  0xe1   : > { %v459_v56 = vrot.slane %v392_v54, 7  ;;  %v443_v59 = vrot.slane %v390_v55, 7 }
  0xe3   : > { %v494_v63 = vsel %vm463_vm2, %v459_v56, %v443_v59  ;;  %v478_v32 = vsel %vm463_vm2, %v443_v59, %v459_v56 }
  0xe4   : > { %580 = vrot.lane.b32.xlu0 %v493_v57, %s1428_s27  ;;  %582 = vrot.lane.b32.xlu1 %v477_v58, %s1428_s27  ;;  %v396_v60 = vpop.permute.xlu1 %395  ;;  %v394_v61 = vpop.permute.xlu0 %393 }
  0xe5   : > { %v460_v62 = vrot.slane %v396_v60, 7  ;;  %v444_v33 = vrot.slane %v394_v61, 7 }
  0xe7   : > { %v495_v34 = vsel %vm463_vm2, %v460_v62, %v444_v33  ;;  %v479_v36 = vsel %vm463_vm2, %v444_v33, %v460_v62 }
  0xe8   : > { %584 = vrot.lane.b32.xlu0 %v494_v63, %s1428_s27  ;;  %586 = vrot.lane.b32.xlu1 %v478_v32, %s1428_s27 }
  0xec   : > { %588 = vrot.lane.b32.xlu0 %v495_v34, %s1428_s27  ;;  %590 = vrot.lane.b32.xlu1 %v479_v36, %s1428_s27 }
  0xf0   : > { %754 = vrot.lane.b32.xlu0 %v1557_v1, %s1429_s28  ;;  %756 = vrot.lane.b32.xlu1 %v1567_v3, %s1429_s28  ;;  %v658_v3 = vld [vmem:[%s1547_s30 + $0x10] sm:$0x1] }
  0xf4   : > { %758 = vrot.lane.b32.xlu0 %v1554_v0, %s1429_s28  ;;  %760 = vrot.lane.b32.xlu1 %v1564_v2, %s1429_s28  ;;  %v657_v0 = vld [vmem:[%s1547_s30] sm:$0x1] }
  0xf8   : > { %762 = vrot.lane.b32.xlu0 %v1577_v5, %s1429_s28  ;;  %764 = vrot.lane.b32.xlu1 %v1574_v4, %s1429_s28 }
  0xfc   : > { %766 = vrot.lane.b32.xlu0 %v1587_v7, %s1429_s28  ;;  %768 = vrot.lane.b32.xlu1 %v1584_v6, %s1429_s28  ;;  %v659_v6 = vld [vmem:[%s1547_s30 + $0x20] sm:$0x1] }
 0x100   : > { %770 = vrot.lane.b32.xlu0 %v1597_v9, %s1429_s28  ;;  %772 = vrot.lane.b32.xlu1 %v1594_v8, %s1429_s28  ;;  %v660_v9 = vld [vmem:[%s1547_s30 + $0x30] sm:$0x1] }
 0x104   : > { %774 = vrot.lane.b32.xlu0 %v1607_v11, %s1429_s28  ;;  %776 = vrot.lane.b32.xlu1 %v1604_v10, %s1429_s28 }
 0x108   : > { %778 = vrot.lane.b32.xlu0 %v1617_v13, %s1429_s28  ;;  %780 = vrot.lane.b32.xlu1 %v1614_v12, %s1429_s28  ;;  %v661_v12 = vld [vmem:[%s1547_s30 + $0x40] sm:$0x1] }
 0x10c   : > { %782 = vrot.lane.b32.xlu0 %v1627_v15, %s1429_s28  ;;  %784 = vrot.lane.b32.xlu1 %v1624_v14, %s1429_s28  ;;  %v662_v15 = vld [vmem:[%s1547_s30 + $0x50] sm:$0x1] }
 0x110   : > { %786 = vrot.lane.b32.xlu0 %v1637_v17, %s1429_s28  ;;  %788 = vrot.lane.b32.xlu1 %v1634_v16, %s1429_s28 }
 0x114   : > { %790 = vrot.lane.b32.xlu0 %v1647_v19, %s1429_s28  ;;  %792 = vrot.lane.b32.xlu1 %v1644_v18, %s1429_s28  ;;  %v663_v18 = vld [vmem:[%s1547_s30 + $0x60] sm:$0x1] }
 0x118   : > { %794 = vrot.lane.b32.xlu0 %v1657_v21, %s1429_s28  ;;  %796 = vrot.lane.b32.xlu1 %v1654_v20, %s1429_s28  ;;  %v664_v21 = vld [vmem:[%s1547_s30 + $0x70] sm:$0x1] }
 0x11c   : > { %798 = vrot.lane.b32.xlu0 %v1667_v23, %s1429_s28  ;;  %800 = vrot.lane.b32.xlu1 %v1664_v22, %s1429_s28 }
 0x120   : > { %802 = vrot.lane.b32.xlu0 %v1677_v25, %s1429_s28  ;;  %804 = vrot.lane.b32.xlu1 %v1674_v24, %s1429_s28  ;;  %v665_v24 = vld [vmem:[%s1547_s30 + $0x80] sm:$0x1] }
 0x122   : > { %v531_v1 = vpop.permute.xlu1 %530  ;;  %v529_v2 = vpop.permute.xlu0 %528 }
 0x123   : > { %626 = vst.msk [vmem:[%s1715_s17 + $0x8] sm:$0xff] %vm624_vm3, %v531_v1  ;;  %625 = vst.msk [vmem:[%s1715_s17] sm:$0xff] %vm624_vm3, %v529_v2 }
 0x124   : > { %674 = vst.msk [vmem:[%s1715_s17] sm:$0x1] %vm673_vm4, %v657_v0  ;;  %806 = vrot.lane.b32.xlu0 %v1687_v27, %s1429_s28  ;;  %808 = vrot.lane.b32.xlu1 %v1684_v26, %s1429_s28  ;;  %v666_v27 = vld [vmem:[%s1547_s30 + $0x90] sm:$0x1] }
 0x126   : > { %v535_v4 = vpop.permute.xlu1 %534  ;;  %v533_v5 = vpop.permute.xlu0 %532 }
 0x127   : > { %628 = vst.msk [vmem:[%s1715_s17 + $0x18] sm:$0xff] %vm624_vm3, %v535_v4  ;;  %627 = vst.msk [vmem:[%s1715_s17 + $0x10] sm:$0xff] %vm624_vm3, %v533_v5 }
 0x128   : > { %675 = vst.msk [vmem:[%s1715_s17 + $0x10] sm:$0x1] %vm673_vm4, %v658_v3  ;;  %810 = vrot.lane.b32.xlu0 %v1697_v29, %s1429_s28  ;;  %812 = vrot.lane.b32.xlu1 %v1694_v28, %s1429_s28 }
 0x12a   : > { %v539_v7 = vpop.permute.xlu1 %538  ;;  %v537_v8 = vpop.permute.xlu0 %536 }
 0x12b   : > { %630 = vst.msk [vmem:[%s1715_s17 + $0x28] sm:$0xff] %vm624_vm3, %v539_v7  ;;  %629 = vst.msk [vmem:[%s1715_s17 + $0x20] sm:$0xff] %vm624_vm3, %v537_v8 }
 0x12c   : > { %676 = vst.msk [vmem:[%s1715_s17 + $0x20] sm:$0x1] %vm673_vm4, %v659_v6  ;;  %814 = vrot.lane.b32.xlu0 %v1707_v31, %s1429_s28  ;;  %816 = vrot.lane.b32.xlu1 %v1704_v30, %s1429_s28  ;;  %v667_v30 = vld [vmem:[%s1547_s30 + $0xa0] sm:$0x1] }
 0x12e   : > { %v543_v10 = vpop.permute.xlu1 %542  ;;  %v541_v11 = vpop.permute.xlu0 %540 }
 0x12f   : > { %632 = vst.msk [vmem:[%s1715_s17 + $0x38] sm:$0xff] %vm624_vm3, %v543_v10  ;;  %631 = vst.msk [vmem:[%s1715_s17 + $0x30] sm:$0xff] %vm624_vm3, %v541_v11 }
 0x130   : > { %677 = vst.msk [vmem:[%s1715_s17 + $0x30] sm:$0x1] %vm673_vm4, %v660_v9 }
 0x132   : > { %v547_v13 = vpop.permute.xlu1 %546  ;;  %v545_v14 = vpop.permute.xlu0 %544 }
 0x133   : > { %634 = vst.msk [vmem:[%s1715_s17 + $0x48] sm:$0xff] %vm624_vm3, %v547_v13  ;;  %633 = vst.msk [vmem:[%s1715_s17 + $0x40] sm:$0xff] %vm624_vm3, %v545_v14 }
 0x134   : > { %678 = vst.msk [vmem:[%s1715_s17 + $0x40] sm:$0x1] %vm673_vm4, %v661_v12 }
 0x136   : > { %v551_v16 = vpop.permute.xlu1 %550  ;;  %v549_v17 = vpop.permute.xlu0 %548 }
 0x137   : > { %636 = vst.msk [vmem:[%s1715_s17 + $0x58] sm:$0xff] %vm624_vm3, %v551_v16  ;;  %635 = vst.msk [vmem:[%s1715_s17 + $0x50] sm:$0xff] %vm624_vm3, %v549_v17 }
 0x138   : > { %679 = vst.msk [vmem:[%s1715_s17 + $0x50] sm:$0x1] %vm673_vm4, %v662_v15 }
 0x13a   : > { %v555_v19 = vpop.permute.xlu1 %554  ;;  %v553_v20 = vpop.permute.xlu0 %552 }
 0x13b   : > { %638 = vst.msk [vmem:[%s1715_s17 + $0x68] sm:$0xff] %vm624_vm3, %v555_v19  ;;  %637 = vst.msk [vmem:[%s1715_s17 + $0x60] sm:$0xff] %vm624_vm3, %v553_v20 }
 0x13c   : > { %680 = vst.msk [vmem:[%s1715_s17 + $0x60] sm:$0x1] %vm673_vm4, %v663_v18 }
 0x13e   : > { %v559_v22 = vpop.permute.xlu1 %558  ;;  %v557_v23 = vpop.permute.xlu0 %556 }
 0x13f   : > { %640 = vst.msk [vmem:[%s1715_s17 + $0x78] sm:$0xff] %vm624_vm3, %v559_v22  ;;  %639 = vst.msk [vmem:[%s1715_s17 + $0x70] sm:$0xff] %vm624_vm3, %v557_v23 }
 0x140   : > { %681 = vst.msk [vmem:[%s1715_s17 + $0x70] sm:$0x1] %vm673_vm4, %v664_v21 }
 0x142   : > { %v563_v25 = vpop.permute.xlu1 %562  ;;  %v561_v26 = vpop.permute.xlu0 %560 }
 0x143   : > { %642 = vst.msk [vmem:[%s1715_s17 + $0x88] sm:$0xff] %vm624_vm3, %v563_v25  ;;  %641 = vst.msk [vmem:[%s1715_s17 + $0x80] sm:$0xff] %vm624_vm3, %v561_v26 }
 0x144   : > { %682 = vst.msk [vmem:[%s1715_s17 + $0x80] sm:$0x1] %vm673_vm4, %v665_v24 }
 0x146   : > { %v567_v28 = vpop.permute.xlu1 %566  ;;  %v565_v29 = vpop.permute.xlu0 %564 }
 0x147   : > { %644 = vst.msk [vmem:[%s1715_s17 + $0x98] sm:$0xff] %vm624_vm3, %v567_v28  ;;  %643 = vst.msk [vmem:[%s1715_s17 + $0x90] sm:$0xff] %vm624_vm3, %v565_v29 }
 0x148   : > { %683 = vst.msk [vmem:[%s1715_s17 + $0x90] sm:$0x1] %vm673_vm4, %v666_v27 }
 0x14a   : > { %v571_v31 = vpop.permute.xlu1 %570  ;;  %v569_v37 = vpop.permute.xlu0 %568 }
 0x14b   : > { %646 = vst.msk [vmem:[%s1715_s17 + $0xa8] sm:$0xff] %vm624_vm3, %v571_v31  ;;  %645 = vst.msk [vmem:[%s1715_s17 + $0xa0] sm:$0xff] %vm624_vm3, %v569_v37 }
 0x14c   : > { %684 = vst.msk [vmem:[%s1715_s17 + $0xa0] sm:$0x1] %vm673_vm4, %v667_v30 }
 0x14e   : > { %v575_v39 = vpop.permute.xlu1 %574  ;;  %v573_v40 = vpop.permute.xlu0 %572 }
 0x14f   : > { %648 = vst.msk [vmem:[%s1715_s17 + $0xb8] sm:$0xff] %vm624_vm3, %v575_v39  ;;  %647 = vst.msk [vmem:[%s1715_s17 + $0xb0] sm:$0xff] %vm624_vm3, %v573_v40 }
 0x150   : > { %685 = vst.msk [vmem:[%s1715_s17 + $0xb0] sm:$0x1] %vm673_vm4, %v668_v38 }
 0x152   : > { %v579_v42 = vpop.permute.xlu1 %578  ;;  %v577_v43 = vpop.permute.xlu0 %576 }
 0x153   : > { %650 = vst.msk [vmem:[%s1715_s17 + $0xc8] sm:$0xff] %vm624_vm3, %v579_v42  ;;  %649 = vst.msk [vmem:[%s1715_s17 + $0xc0] sm:$0xff] %vm624_vm3, %v577_v43 }
 0x154   : > { %686 = vst.msk [vmem:[%s1715_s17 + $0xc0] sm:$0x1] %vm673_vm4, %v669_v41 }
 0x156   : > { %v583_v45 = vpop.permute.xlu1 %582  ;;  %v581_v46 = vpop.permute.xlu0 %580 }
 0x157   : > { %652 = vst.msk [vmem:[%s1715_s17 + $0xd8] sm:$0xff] %vm624_vm3, %v583_v45  ;;  %651 = vst.msk [vmem:[%s1715_s17 + $0xd0] sm:$0xff] %vm624_vm3, %v581_v46 }
 0x158   : > { %687 = vst.msk [vmem:[%s1715_s17 + $0xd0] sm:$0x1] %vm673_vm4, %v670_v44 }
 0x15a   : > { %v587_v48 = vpop.permute.xlu1 %586  ;;  %v585_v49 = vpop.permute.xlu0 %584 }
 0x15b   : > { %654 = vst.msk [vmem:[%s1715_s17 + $0xe8] sm:$0xff] %vm624_vm3, %v587_v48  ;;  %653 = vst.msk [vmem:[%s1715_s17 + $0xe0] sm:$0xff] %vm624_vm3, %v585_v49 }
 0x15c   : > { %688 = vst.msk [vmem:[%s1715_s17 + $0xe0] sm:$0x1] %vm673_vm4, %v671_v47 }
 0x15e   : > { %v591_v51 = vpop.permute.xlu1 %590  ;;  %v589_v52 = vpop.permute.xlu0 %588 }
 0x15f   : > { %656 = vst.msk [vmem:[%s1715_s17 + $0xf8] sm:$0xff] %vm624_vm3, %v591_v51  ;;  %655 = vst.msk [vmem:[%s1715_s17 + $0xf0] sm:$0xff] %vm624_vm3, %v589_v52 }
 0x160   : > { %689 = vst.msk [vmem:[%s1715_s17 + $0xf0] sm:$0x1] %vm673_vm4, %v672_v50 }
 0x162   : > { %v757_v53 = vpop.permute.xlu1 %756  ;;  %v755_v54 = vpop.permute.xlu0 %754 }
 0x163   : > { %v866_v55 = vrot.slane %v757_v53, 1  ;;  %v850_v56 = vrot.slane %v755_v54, 1 }
 0x165   : > { %v899_v57 = vsel %vm882_vm5, %v866_v55, %v850_v56  ;;  %v883_v58 = vsel %vm882_vm5, %v850_v56, %v866_v55 }
 0x166   : > { %v2189_v59 = vpop.permute.xlu1 %760  ;;  %949 = vrot.lane.b32.xlu1 %v899_v57, %s1430_s29  ;;  %947 = vrot.lane.b32.xlu0 %v883_v58, %s1430_s29  ;;  %v2193_v60 = vpop.permute.xlu0 %758 }
 0x167   : > { %v867_v61 = vrot.slane %v2189_v59, 1  ;;  %v851_v62 = vrot.slane %v2193_v60, 1 }
 0x169   : > { %v900_v63 = vsel %vm882_vm5, %v867_v61, %v851_v62 }
 0x16a   : > { %v2203_v32 = vpop.permute.xlu1 %764  ;;  %953 = vrot.lane.b32.xlu0 %v900_v63, %s1430_s29  ;;  %v2206_v33 = vpop.permute.xlu0 %762 }
 0x16b   : > { %v868_v34 = vrot.slane %v2203_v32, 1  ;;  %v852_v36 = vrot.slane %v2206_v33, 1 }
 0x16d   : > { %v901_v0 = vsel %vm882_vm5, %v868_v34, %v852_v36  ;;  %v885_v59 = vsel %vm882_vm5, %v852_v36, %v868_v34 }
 0x16e   : > { %v2216_v1 = vpop.permute.xlu1 %768  ;;  %957 = vrot.lane.b32.xlu1 %v901_v0, %s1430_s29  ;;  %v2219_v2 = vpop.permute.xlu0 %766 }
 0x16f   : > { %v869_v3 = vrot.slane %v2216_v1, 1  ;;  %v853_v4 = vrot.slane %v2219_v2, 1 }
 0x171   : > { %v902_v5 = vsel %vm882_vm5, %v869_v3, %v853_v4 }
 0x172   : > { %v2229_v6 = vpop.permute.xlu1 %772  ;;  %961 = vrot.lane.b32.xlu0 %v902_v5, %s1430_s29  ;;  %v2232_v7 = vpop.permute.xlu0 %770 }
 0x173   : > { %v870_v8 = vrot.slane %v2229_v6, 1  ;;  %v854_v9 = vrot.slane %v2232_v7, 1  ;;  %v1076_v7 = vld [vmem:[%s1547_s30 + $0xf] sm:$0x1] }
 0x175   : > { %v903_v10 = vsel %vm882_vm5, %v870_v8, %v854_v9 }
 0x176   : > { %v2242_v11 = vpop.permute.xlu1 %776  ;;  %965 = vrot.lane.b32.xlu1 %v903_v10, %s1430_s29  ;;  %v2245_v12 = vpop.permute.xlu0 %774 }
 0x177   : > { %v871_v13 = vrot.slane %v2242_v11, 1  ;;  %v855_v14 = vrot.slane %v2245_v12, 1  ;;  %v1078_v12 = vld [vmem:[%s1547_s30 + $0x2f] sm:$0x1] }
 0x179   : > { %v904_v15 = vsel %vm882_vm5, %v871_v13, %v855_v14  ;;  %v888_v60 = vsel %vm882_vm5, %v855_v14, %v871_v13  ;;  %v1079_v14 = vld [vmem:[%s1547_s30 + $0x3f] sm:$0x1] }
 0x17a   : > { %v2255_v16 = vpop.permute.xlu1 %780  ;;  %969 = vrot.lane.b32.xlu0 %v904_v15, %s1430_s29  ;;  %v2258_v17 = vpop.permute.xlu0 %778 }
 0x17b   : > { %v872_v18 = vrot.slane %v2255_v16, 1  ;;  %v856_v19 = vrot.slane %v2258_v17, 1  ;;  %v1080_v17 = vld [vmem:[%s1547_s30 + $0x4f] sm:$0x1] }
 0x17d   : > { %v905_v20 = vsel %vm882_vm5, %v872_v18, %v856_v19  ;;  %v889_v32 = vsel %vm882_vm5, %v856_v19, %v872_v18  ;;  %v1081_v19 = vld [vmem:[%s1547_s30 + $0x5f] sm:$0x1] }
 0x17e   : > { %v2268_v21 = vpop.permute.xlu1 %784  ;;  %973 = vrot.lane.b32.xlu1 %v905_v20, %s1430_s29  ;;  %v2271_v22 = vpop.permute.xlu0 %782 }
 0x17f   : > { %v873_v23 = vrot.slane %v2268_v21, 1  ;;  %v857_v24 = vrot.slane %v2271_v22, 1 }
 0x181   : > { %v906_v25 = vsel %vm882_vm5, %v873_v23, %v857_v24 }
 0x182   : > { %v2279_v26 = vpop.permute.xlu1 %788  ;;  %977 = vrot.lane.b32.xlu0 %v906_v25, %s1430_s29  ;;  %v2282_v27 = vpop.permute.xlu0 %786 }
 0x183   : > { %v874_v28 = vrot.slane %v2279_v26, 1  ;;  %v858_v29 = vrot.slane %v2282_v27, 1 }
 0x185   : > { %v907_v30 = vsel %vm882_vm5, %v874_v28, %v858_v29  ;;  %v891_v34 = vsel %vm882_vm5, %v858_v29, %v874_v28  ;;  %v1083_v28 = vld [vmem:[%s1547_s30 + $0x7f] sm:$0x1] }
 0x186   : > { %v793_v31 = vpop.permute.xlu1 %792  ;;  %981 = vrot.lane.b32.xlu1 %v907_v30, %s1430_s29  ;;  %v791_v37 = vpop.permute.xlu0 %790 }
 0x187   : > { %v875_v38 = vrot.slane %v793_v31, 1  ;;  %v859_v39 = vrot.slane %v791_v37, 1  ;;  %v884_v31 = vsel %vm882_vm5, %v851_v62, %v867_v61  ;;  %v887_v61 = vsel %vm882_vm5, %v854_v9, %v870_v8 }
 0x188   : > { %v890_v62 = vsel %vm882_vm5, %v857_v24, %v873_v23  ;;  %v1082_v23 = vld [vmem:[%s1547_s30 + $0x6f] sm:$0x1] }
 0x189   : > { %v908_v40 = vsel %vm882_vm5, %v875_v38, %v859_v39  ;;  %v892_v33 = vsel %vm882_vm5, %v859_v39, %v875_v38  ;;  %v1084_v38 = vld [vmem:[%s1547_s30 + $0x8f] sm:$0x1] }
 0x18a   : > { %v797_v41 = vpop.permute.xlu1 %796  ;;  %985 = vrot.lane.b32.xlu0 %v908_v40, %s1430_s29  ;;  %v795_v42 = vpop.permute.xlu0 %794  ;;  %v886_v40 = vsel %vm882_vm5, %v853_v4, %v869_v3 }
 0x18b   : > { %v876_v43 = vrot.slane %v797_v41, 1  ;;  %v860_v44 = vrot.slane %v795_v42, 1  ;;  %v1085_v41 = vld [vmem:[%s1547_s30 + $0x9f] sm:$0x1] }
 0x18d   : > { %v909_v45 = vsel %vm882_vm5, %v876_v43, %v860_v44  ;;  %v893_v1 = vsel %vm882_vm5, %v860_v44, %v876_v43  ;;  %v1086_v43 = vld [vmem:[%s1547_s30 + $0xaf] sm:$0x1] }
 0x18e   : > { %v801_v46 = vpop.permute.xlu1 %800  ;;  %989 = vrot.lane.b32.xlu1 %v909_v45, %s1430_s29  ;;  %v799_v47 = vpop.permute.xlu0 %798  ;;  %v1087_v45 = vld [vmem:[%s1547_s30 + $0xbf] sm:$0x1] }
 0x18f   : > { %v877_v48 = vrot.slane %v801_v46, 1  ;;  %v861_v49 = vrot.slane %v799_v47, 1  ;;  %v1088_v47 = vld [vmem:[%s1547_s30 + $0xcf] sm:$0x1] }
 0x191   : > { %v910_v50 = vsel %vm882_vm5, %v877_v48, %v861_v49  ;;  %v894_v36 = vsel %vm882_vm5, %v861_v49, %v877_v48  ;;  %v1089_v49 = vld [vmem:[%s1547_s30 + $0xdf] sm:$0x1] }
 0x192   : > { %v805_v51 = vpop.permute.xlu1 %804  ;;  %993 = vrot.lane.b32.xlu0 %v910_v50, %s1430_s29  ;;  %v803_v52 = vpop.permute.xlu0 %802 }
 0x193   : > { %v878_v53 = vrot.slane %v805_v51, 1  ;;  %v862_v54 = vrot.slane %v803_v52, 1  ;;  %v1090_v51 = vld [vmem:[%s1547_s30 + $0xef] sm:$0x1] }
 0x195   : > { %v911_v55 = vsel %vm882_vm5, %v878_v53, %v862_v54  ;;  %v895_v3 = vsel %vm882_vm5, %v862_v54, %v878_v53  ;;  %v1091_v53 = vld [vmem:[%s1547_s30 + $0xff] sm:$0x1] }
 0x196   : > { %v809_v56 = vpop.permute.xlu1 %808  ;;  %997 = vrot.lane.b32.xlu1 %v911_v55, %s1430_s29  ;;  %v807_v57 = vpop.permute.xlu0 %806 }
 0x197   : > { %v879_v58 = vrot.slane %v809_v56, 1  ;;  %v863_v63 = vrot.slane %v807_v57, 1 }
 0x199   : > { %v912_v0 = vsel %vm882_vm5, %v879_v58, %v863_v63  ;;  %v896_v2 = vsel %vm882_vm5, %v863_v63, %v879_v58 }
 0x19a   : > { %v813_v5 = vpop.permute.xlu1 %812  ;;  %1001 = vrot.lane.b32.xlu0 %v912_v0, %s1430_s29  ;;  %v811_v10 = vpop.permute.xlu0 %810 }
 0x19b   : > { %v880_v15 = vrot.slane %v813_v5, 1  ;;  %v864_v20 = vrot.slane %v811_v10, 1 }
 0x19d   : > { %v913_v22 = vsel %vm882_vm5, %v880_v15, %v864_v20  ;;  %v897_v4 = vsel %vm882_vm5, %v864_v20, %v880_v15 }
 0x19e   : > { %v817_v25 = vpop.permute.xlu1 %816  ;;  %1005 = vrot.lane.b32.xlu1 %v913_v22, %s1430_s29  ;;  %v815_v26 = vpop.permute.xlu0 %814 }
 0x19f   : > { %v881_v27 = vrot.slane %v817_v25, 1  ;;  %v865_v30 = vrot.slane %v815_v26, 1 }
 0x1a1   : > { %v914_v37 = vsel %vm882_vm5, %v881_v27, %v865_v30  ;;  %v898_v6 = vsel %vm882_vm5, %v865_v30, %v881_v27 }
 0x1a2   : > { %951 = vrot.lane.b32.xlu1 %v884_v31, %s1430_s29  ;;  %1009 = vrot.lane.b32.xlu0 %v914_v37, %s1430_s29 }
 0x1a6   : > { %959 = vrot.lane.b32.xlu1 %v886_v40, %s1430_s29  ;;  %955 = vrot.lane.b32.xlu0 %v885_v59, %s1430_s29 }
 0x1aa   : > { %967 = vrot.lane.b32.xlu1 %v888_v60, %s1430_s29  ;;  %963 = vrot.lane.b32.xlu0 %v887_v61, %s1430_s29 }
 0x1ae   : > { %975 = vrot.lane.b32.xlu1 %v890_v62, %s1430_s29  ;;  %971 = vrot.lane.b32.xlu0 %v889_v32, %s1430_s29 }
 0x1b2   : > { %983 = vrot.lane.b32.xlu1 %v892_v33, %s1430_s29  ;;  %979 = vrot.lane.b32.xlu0 %v891_v34, %s1430_s29 }
 0x1b6   : > { %991 = vrot.lane.b32.xlu1 %v894_v36, %s1430_s29  ;;  %987 = vrot.lane.b32.xlu0 %v893_v1, %s1430_s29 }
 0x1ba   : > { %999 = vrot.lane.b32.xlu1 %v896_v2, %s1430_s29  ;;  %995 = vrot.lane.b32.xlu0 %v895_v3, %s1430_s29 }
 0x1be   : > { %1003 = vrot.lane.b32.xlu0 %v897_v4, %s1430_s29  ;;  %1007 = vrot.lane.b32.xlu1 %v898_v6, %s1430_s29 }
 0x1d8   : > { %v950_v8 = vpop.permute.xlu1 %949  ;;  %v948_v9 = vpop.permute.xlu0 %947 }
 0x1d9   : > { %1045 = vst.msk [vmem:[%s1715_s17 + $0x8] sm:$0xff] %vm1043_vm6, %v950_v8  ;;  %1044 = vst.msk [vmem:[%s1715_s17] sm:$0xff] %vm1043_vm6, %v948_v9 }
 0x1da   : > { %1093 = vst.msk [vmem:[%s1715_s17 + $0xf] sm:$0x1] %vm1092_vm7, %v1076_v7 }
 0x1dc   : > { %v954_v11 = vpop.permute.xlu0 %953 }
 0x1dd   : > { %1047 = vst.msk [vmem:[%s1715_s17 + $0x18] sm:$0xff] %vm1043_vm6, %v954_v11 }
 0x1de   : > { %1094 = vst.msk [vmem:[%s1715_s17 + $0x1f] sm:$0x1] %vm1092_vm7, %v1077_v35 }
 0x1e0   : > { %v958_v13 = vpop.permute.xlu1 %957 }
 0x1e1   : > { %1049 = vst.msk [vmem:[%s1715_s17 + $0x28] sm:$0xff] %vm1043_vm6, %v958_v13 }
 0x1e2   : > { %1095 = vst.msk [vmem:[%s1715_s17 + $0x2f] sm:$0x1] %vm1092_vm7, %v1078_v12 }
 0x1e4   : > { %v962_v16 = vpop.permute.xlu0 %961 }
 0x1e5   : > { %1051 = vst.msk [vmem:[%s1715_s17 + $0x38] sm:$0xff] %vm1043_vm6, %v962_v16 }
 0x1e6   : > { %1096 = vst.msk [vmem:[%s1715_s17 + $0x3f] sm:$0x1] %vm1092_vm7, %v1079_v14 }
 0x1e8   : > { %v966_v18 = vpop.permute.xlu1 %965 }
 0x1e9   : > { %1053 = vst.msk [vmem:[%s1715_s17 + $0x48] sm:$0xff] %vm1043_vm6, %v966_v18 }
 0x1ea   : > { %1097 = vst.msk [vmem:[%s1715_s17 + $0x4f] sm:$0x1] %vm1092_vm7, %v1080_v17 }
 0x1ec   : > { %v970_v21 = vpop.permute.xlu0 %969 }
 0x1ed   : > { %1055 = vst.msk [vmem:[%s1715_s17 + $0x58] sm:$0xff] %vm1043_vm6, %v970_v21 }
 0x1ee   : > { %1098 = vst.msk [vmem:[%s1715_s17 + $0x5f] sm:$0x1] %vm1092_vm7, %v1081_v19 }
 0x1f0   : > { %v974_v24 = vpop.permute.xlu1 %973 }
 0x1f1   : > { %1057 = vst.msk [vmem:[%s1715_s17 + $0x68] sm:$0xff] %vm1043_vm6, %v974_v24 }
 0x1f2   : > { %1099 = vst.msk [vmem:[%s1715_s17 + $0x6f] sm:$0x1] %vm1092_vm7, %v1082_v23 }
 0x1f4   : > { %v978_v29 = vpop.permute.xlu0 %977 }
 0x1f5   : > { %1059 = vst.msk [vmem:[%s1715_s17 + $0x78] sm:$0xff] %vm1043_vm6, %v978_v29 }
 0x1f6   : > { %1100 = vst.msk [vmem:[%s1715_s17 + $0x7f] sm:$0x1] %vm1092_vm7, %v1083_v28 }
 0x1f8   : > { %v982_v39 = vpop.permute.xlu1 %981 }
 0x1f9   : > { %1061 = vst.msk [vmem:[%s1715_s17 + $0x88] sm:$0xff] %vm1043_vm6, %v982_v39 }
 0x1fa   : > { %1101 = vst.msk [vmem:[%s1715_s17 + $0x8f] sm:$0x1] %vm1092_vm7, %v1084_v38 }
 0x1fc   : > { %v986_v42 = vpop.permute.xlu0 %985 }
 0x1fd   : > { %1063 = vst.msk [vmem:[%s1715_s17 + $0x98] sm:$0xff] %vm1043_vm6, %v986_v42 }
 0x1fe   : > { %1102 = vst.msk [vmem:[%s1715_s17 + $0x9f] sm:$0x1] %vm1092_vm7, %v1085_v41 }
 0x200   : > { %v990_v44 = vpop.permute.xlu1 %989 }
 0x201   : > { %1065 = vst.msk [vmem:[%s1715_s17 + $0xa8] sm:$0xff] %vm1043_vm6, %v990_v44 }
 0x202   : > { %1103 = vst.msk [vmem:[%s1715_s17 + $0xaf] sm:$0x1] %vm1092_vm7, %v1086_v43 }
 0x204   : > { %v994_v46 = vpop.permute.xlu0 %993 }
 0x205   : > { %1067 = vst.msk [vmem:[%s1715_s17 + $0xb8] sm:$0xff] %vm1043_vm6, %v994_v46 }
 0x206   : > { %1104 = vst.msk [vmem:[%s1715_s17 + $0xbf] sm:$0x1] %vm1092_vm7, %v1087_v45 }
 0x208   : > { %v998_v48 = vpop.permute.xlu1 %997 }
 0x209   : > { %1069 = vst.msk [vmem:[%s1715_s17 + $0xc8] sm:$0xff] %vm1043_vm6, %v998_v48 }
 0x20a   : > { %1105 = vst.msk [vmem:[%s1715_s17 + $0xcf] sm:$0x1] %vm1092_vm7, %v1088_v47 }
 0x20c   : > { %v1002_v50 = vpop.permute.xlu0 %1001 }
 0x20d   : > { %1071 = vst.msk [vmem:[%s1715_s17 + $0xd8] sm:$0xff] %vm1043_vm6, %v1002_v50 }
 0x20e   : > { %1106 = vst.msk [vmem:[%s1715_s17 + $0xdf] sm:$0x1] %vm1092_vm7, %v1089_v49 }
 0x210   : > { %v1006_v52 = vpop.permute.xlu1 %1005 }
 0x211   : > { %1073 = vst.msk [vmem:[%s1715_s17 + $0xe8] sm:$0xff] %vm1043_vm6, %v1006_v52 }
 0x212   : > { %1107 = vst.msk [vmem:[%s1715_s17 + $0xef] sm:$0x1] %vm1092_vm7, %v1090_v51 }
 0x214   : > { %v952_v54 = vpop.permute.xlu1 %951  ;;  %v1010_v55 = vpop.permute.xlu0 %1009 }
 0x215   : > { %1046 = vst.msk [vmem:[%s1715_s17 + $0x10] sm:$0xff] %vm1043_vm6, %v952_v54  ;;  %1075 = vst.msk [vmem:[%s1715_s17 + $0xf8] sm:$0xff] %vm1043_vm6, %v1010_v55 }
 0x216   : > { %1108 = vst.msk [vmem:[%s1715_s17 + $0xff] sm:$0x1] %vm1092_vm7, %v1091_v53 }
 0x218   : > { %v960_v56 = vpop.permute.xlu1 %959  ;;  %v956_v57 = vpop.permute.xlu0 %955 }
 0x219   : > { %1050 = vst.msk [vmem:[%s1715_s17 + $0x30] sm:$0xff] %vm1043_vm6, %v960_v56  ;;  %1048 = vst.msk [vmem:[%s1715_s17 + $0x20] sm:$0xff] %vm1043_vm6, %v956_v57 }
 0x21c   : > { %v968_v58 = vpop.permute.xlu1 %967  ;;  %v964_v63 = vpop.permute.xlu0 %963 }
 0x21d   : > { %1054 = vst.msk [vmem:[%s1715_s17 + $0x50] sm:$0xff] %vm1043_vm6, %v968_v58  ;;  %1052 = vst.msk [vmem:[%s1715_s17 + $0x40] sm:$0xff] %vm1043_vm6, %v964_v63 }
 0x220   : > { %v976_v0 = vpop.permute.xlu1 %975  ;;  %v972_v5 = vpop.permute.xlu0 %971 }
 0x221   : > { %1058 = vst.msk [vmem:[%s1715_s17 + $0x70] sm:$0xff] %vm1043_vm6, %v976_v0  ;;  %1056 = vst.msk [vmem:[%s1715_s17 + $0x60] sm:$0xff] %vm1043_vm6, %v972_v5 }
 0x224   : > { %v984_v10 = vpop.permute.xlu1 %983  ;;  %v980_v15 = vpop.permute.xlu0 %979 }
 0x225   : > { %1062 = vst.msk [vmem:[%s1715_s17 + $0x90] sm:$0xff] %vm1043_vm6, %v984_v10  ;;  %1060 = vst.msk [vmem:[%s1715_s17 + $0x80] sm:$0xff] %vm1043_vm6, %v980_v15 }
 0x228   : > { %v992_v20 = vpop.permute.xlu1 %991  ;;  %v988_v22 = vpop.permute.xlu0 %987 }
 0x229   : > { %1066 = vst.msk [vmem:[%s1715_s17 + $0xb0] sm:$0xff] %vm1043_vm6, %v992_v20  ;;  %1064 = vst.msk [vmem:[%s1715_s17 + $0xa0] sm:$0xff] %vm1043_vm6, %v988_v22 }
 0x22c   : > { %v1000_v25 = vpop.permute.xlu1 %999  ;;  %v996_v26 = vpop.permute.xlu0 %995 }
 0x22d   : > { %1070 = vst.msk [vmem:[%s1715_s17 + $0xd0] sm:$0xff] %vm1043_vm6, %v1000_v25  ;;  %1068 = vst.msk [vmem:[%s1715_s17 + $0xc0] sm:$0xff] %vm1043_vm6, %v996_v26 }
 0x230   : > { %v1008_v27 = vpop.permute.xlu1 %1007  ;;  %v1004_v30 = vpop.permute.xlu0 %1003 }
 0x231   : > { %1074 = vst.msk [vmem:[%s1715_s17 + $0xf0] sm:$0xff] %vm1043_vm6, %v1008_v27  ;;  %1072 = vst.msk [vmem:[%s1715_s17 + $0xe0] sm:$0xff] %vm1043_vm6, %v1004_v30 }
 0x232   : > { %1371 = shalt.err (!%p1368_p10)
}
 0x233   : > { %s1372_s21 = scalar_lea.hbm %s2494_s11, 4096  ;;  %s1376_s26 = scalar_lea.hbm %s2544_s1, 8192 }
 0x234   : > { %p1373_p0 = scmp.ne.s32.totalorder %s2494_s11, %s1372_s21  ;;  %p1377_p1 = scmp.lt.s32.totalorder %s2494_s11, %s2544_s1 }
 0x235   : > { %p1378_p3 = scmp.lt.s32.totalorder %s1376_s26, %s1372_s21 }
 0x236   : > { %p1374_p2 = pnand %p1373_p0, %p2553_p12 }
 0x237   : > { %p1379_p6 = por %p1378_p3, %p1377_p1 }
 0x238   : > { %p1375_p9 = pneg %p1374_p2 }
 0x23a   : > { %p1380_p11 = pnand %p1379_p6, %p1375_p9 }
 0x23c   : > { %1383 = shalt.err (!%p1380_p11)
}
 0x23d   : > { %s1432_s17 = smov 128   ;;  %s1433_s27 = smov 8  }
 0x23e   : > { %1278 = dma.vmem_to_hbm [thread:$0]  (%p2553_p12), %s2496_s3, 4096, %s2494_s11, %s1110_s10, %s1432_s17, %s1432_s17, %s1433_s27  }
 0x23f PF: > { %s1138_s28 = sand.u32 1, %s1410_s6   ;;  %p2554_p13 = scmp.ne.s32.totalorder %s2550_s19, 0 }
 0x240   : > { %p2555_p4 = scmp.ge.s32.totalorder %s1422_s9, 2  ;;  %s1139_s29 = scalar_lea.sflag [#allocation4], %s1138_s28 }
 0x242   : > { %p1285_p5 = pnand %p2555_p4, %p2554_p13 }
 0x244   : > { %p1286_p7 = pneg %p1285_p5 }
 0x246   : > { %1405 = dma.done.wait (%p1286_p7), %s1139_s29, 4096  }
 0x247   : > { %1407 = vsyncadd (%p1286_p7), %s1139_s29, 4294963200  ;;  %p14_p8 = scmp.ge.s32.totalorder %s1469_s12, 4   ;;  %s2556_s6 = smov %s1414_s7 }
 0x248   : > { %s2557_s7 = smov %s1418_s8  ;;  %s2558_s8 = smov %s1481_s15 }
 0x249   : > { %s2559_s9 = smov %s1469_s12  ;;  %16 = sbr.rel (!%p14_p8) target bundleno = 5 (0x5), region = 73 }
 0x24e   :  { %1144 = vsyncpa [#allocation3], 1 }
 0x24f   :  { %1146 = vsyncpa [#allocation3 + $0x1], 1 }
 0x250   :  { %1147 = vsyncpa [#allocation4], 1 }
 0x251   :  { %1149 = vsyncpa [#allocation4 + $0x1], 1 }

</bundles_post_ra>
